<compile_context>
chip_gen: v5e
topology: v5e:2x2
jax: 0.10.0
libtpu: 0.0.40
codegen_flags: <defaults>
</compile_context>

<pallas_src>
import jax
import jax.numpy as jnp
from jax.experimental import pallas as pl
from jax.experimental.pallas import tpu as pltpu


def _vae_kernel(x_ref, eps_ref,
                w1_ref, b1_ref,
                wms_ref, bms_ref,
                wz_ref, bz_ref,
                wo_ref, bo_ref,
                xr_ref, ms_ref):
    """One batch tile: encode -> fused packed mu|sigma head -> reparametrize -> decode."""
    zh = eps_ref.shape[-1]          # Zh = round_up(z_dim, 64); ms slab is 2*Zh lanes
    mdt = w1_ref.dtype              # matmul operand dtype (bf16 by default)

    x = x_ref[...]

    # encode: h = relu(x @ W1 + b1)              (f32 accumulation)
    h = jnp.dot(x.astype(mdt), w1_ref[...], preferred_element_type=jnp.float32)
    h = jnp.maximum(h + b1_ref[...], 0.0)                       # [TB, Hp] f32

    # fused mu|sigma head: one matmul, compact lane-packed [TB, 2*Zh] slab
    ms = jnp.dot(h.astype(mdt), wms_ref[...], preferred_element_type=jnp.float32)
    ms = ms + bms_ref[...]
    mu = ms[:, :zh]                                             # lanes [0, Zh)
    sigma = ms[:, zh:]                                          # lanes [Zh, 2*Zh)

    # reparametrize: z = mu + sigma * eps   (padded sigma lanes are exactly zero)
    z = mu + sigma * eps_ref[...].astype(jnp.float32)           # [TB, Zh] f32

    # decode: h2 = relu(z @ Wz + bz); x_rec = sigmoid(h2 @ Wo + bo)
    h2 = jnp.dot(z.astype(mdt), wz_ref[...], preferred_element_type=jnp.float32)
    h2 = jnp.maximum(h2 + bz_ref[...], 0.0)
    logits = jnp.dot(h2.astype(mdt), wo_ref[...], preferred_element_type=jnp.float32)
    logits = logits + bo_ref[...]
    x_rec = jax.nn.sigmoid(logits)                              # EUP logistic, numerically safe

    xr_ref[...] = x_rec.astype(xr_ref.dtype)
    ms_ref[...] = ms.astype(ms_ref.dtype)


def _round_up(n, m):
    return ((n + m - 1) // m) * m


def vae_forward(x, eps, params, *, batch_tile=512, param_dtype=jnp.bfloat16, out_dtype=None):
    """Fused VAE forward.

    x:   [B, input_dim]  (streamed through HBM at its own dtype; bf16 recommended)
    eps: [B, z_dim]      (the torch.randn_like(sigma) sample)
    params: dict of weights stored [in, out] and biases [1, out] (any float dtype).
    Returns (x_reconstructed [B, input_dim], mu [B, z_dim], sigma [B, z_dim]) in out_dtype
    (defaults to x.dtype).
    """
    B, input_dim = x.shape
    h_dim = params["w1"].shape[1]
    z_dim = params["wmu"].shape[1]
    if out_dtype is None:
        out_dtype = x.dtype

    Hp = _round_up(h_dim, 128)            # hidden width (lane-dense)
    Zh = _round_up(max(z_dim, 1), 64)     # half-slab width; mu|sigma slab = 2*Zh lanes

    # Batch tile: multiple of 8, at most batch_tile (<=512 for v7x VMEM), and small enough that
    # the grid has >= ~4 steps (feeds both v7x TensorCores, keeps pipelining per core).
    TB = max(8, min(_round_up(batch_tile, 8), _round_up(pl.cdiv(B, 4), 8)))
    grid = (pl.cdiv(B, TB),)              # ragged final tile is clipped by Pallas — no batch pad

    f32 = jnp.float32

    def pad_cols(a, cols):
        return jnp.pad(a, ((0, 0), (0, cols - a.shape[1])))

    def pad_rows(a, rows):
        return jnp.pad(a, ((0, rows - a.shape[0]), (0, 0)))

    # Weights: pad only hidden/latent dims (cheap, small); input_dim stays unpadded everywhere.
    w1 = pad_cols(params["w1"].astype(f32), Hp).astype(param_dtype)              # [D, Hp]
    b1 = pad_cols(params["b1"].astype(f32), Hp)                                  # [1, Hp] f32
    wms = jnp.concatenate([pad_cols(params["wmu"].astype(f32), Zh),
                           pad_cols(params["wsig"].astype(f32), Zh)], axis=1)
    wms = pad_rows(wms, Hp).astype(param_dtype)                                  # [Hp, 2*Zh]
    bms = jnp.concatenate([pad_cols(params["bmu"].astype(f32), Zh),
                           pad_cols(params["bsig"].astype(f32), Zh)], axis=1)    # [1, 2*Zh] f32
    wz = pad_cols(pad_rows(params["wz"].astype(f32), Zh), Hp).astype(param_dtype)  # [Zh, Hp]
    bz = pad_cols(params["bz"].astype(f32), Hp)                                  # [1, Hp] f32
    wo = pad_rows(params["wo"].astype(f32), Hp).astype(param_dtype)              # [Hp, D]
    bo = params["bo"].astype(f32)                                                # [1, D] f32

    # eps padded to Zh lanes (tiny copy; padded sigma lanes are zero so padded eps is irrelevant)
    eps_p = pad_cols(eps, Zh)

    def row_spec(cols):
        # Batch-tiled activations/outputs; full-extent last dim -> contiguous HBM DMA per tile.
        return pl.BlockSpec((TB, cols), lambda i: (i, 0))

    def resident(shape):
        # Constant block index -> fetched once, stays resident in VMEM across grid steps.
        return pl.BlockSpec(shape, lambda i: (0, 0))

    in_specs = [
        row_spec(input_dim),                                    # x
        row_spec(Zh),                                           # eps
        resident((input_dim, Hp)), resident((1, Hp)),           # W1, b1
        resident((Hp, 2 * Zh)), resident((1, 2 * Zh)),          # W_ms, b_ms
        resident((Zh, Hp)), resident((1, Hp)),                  # Wz, bz
        resident((Hp, input_dim)), resident((1, input_dim)),    # Wo, bo
    ]
    out_specs = (row_spec(input_dim), row_spec(2 * Zh))
    out_shape = (
        jax.ShapeDtypeStruct((B, input_dim), out_dtype),        # x_reconstructed
        jax.ShapeDtypeStruct((B, 2 * Zh), out_dtype),           # packed mu|sigma slab
    )

    p_bytes = jnp.dtype(param_dtype).itemsize
    io_bytes = jnp.dtype(out_dtype).itemsize
    x_bytes = jnp.dtype(x.dtype).itemsize
    weight_elems = input_dim * Hp + Hp * 2 * Zh + Zh * Hp + Hp * input_dim
    flops = 2 * B * weight_elems
    bytes_accessed = (
        x_bytes * B * input_dim
        + jnp.dtype(eps_p.dtype).itemsize * B * Zh
        + p_bytes * weight_elems
        + 4 * (2 * Hp + 2 * Zh + input_dim)
        + io_bytes * B * (input_dim + 2 * Zh)
    )

    xr, ms = pl.pallas_call(
        _vae_kernel,
        out_shape=out_shape,
        grid=grid,
        in_specs=in_specs,
        out_specs=out_specs,
        compiler_params=pltpu.CompilerParams(
            dimension_semantics=("parallel",),          # v7x: split batch tiles across both TCs
            vmem_limit_bytes=32 * 1024 * 1024,          # headroom for 512-row f32 tiles on v5e
        ),
        cost_estimate=pl.CostEstimate(
            flops=flops,
            transcendentals=B * input_dim,
            bytes_accessed=bytes_accessed,
        ),
    )(x, eps_p, w1, b1, wms, bms, wz, bz, wo, bo)

    mu = ms[:, :z_dim]
    sigma = ms[:, Zh:Zh + z_dim]
    return xr, mu, sigma


def init_params(key, input_dim, h_dim, z_dim):
    """Deterministic PyTorch-style (uniform +-1/sqrt(fan_in)) init; weights stored [in, out]."""
    def linear(key, fan_in, fan_out):
        kw, kb = jax.random.split(key)
        bound = 1.0 / jnp.sqrt(fan_in)
        w = jax.random.uniform(kw, (fan_in, fan_out), jnp.float32, -bound, bound)
        b = jax.random.uniform(kb, (1, fan_out), jnp.float32, -bound, bound)
        return w, b

    keys = jax.random.split(key, 5)
    w1, b1 = linear(keys[0], input_dim, h_dim)     # sh_2hid
    wmu, bmu = linear(keys[1], h_dim, z_dim)       # hid_2mu
    wsig, bsig = linear(keys[2], h_dim, z_dim)     # hid_2sigma
    wz, bz = linear(keys[3], z_dim, h_dim)         # z_2hid
    wo, bo = linear(keys[4], h_dim, input_dim)     # hid_2sh
    return dict(w1=w1, b1=b1, wmu=wmu, bmu=bmu, wsig=wsig, bsig=bsig,
                wz=wz, bz=bz, wo=wo, bo=bo)


if __name__ == "__main__":
    # Small MNIST-like shapes: flattened 14x14 input, modest hidden/latent widths.
    INPUT_DIM = 196
    H_DIM = 64
    Z_DIM = 16
    BATCH = 32            # tiles as 4 grid steps of 8 rows -> exercises the pipeline/megacore path

    key = jax.random.PRNGKey(0)
    k_x, k_eps, k_params = jax.random.split(key, 3)

    x32 = jax.random.uniform(k_x, (BATCH, INPUT_DIM), jnp.float32)   # normalized pixels
    eps32 = jax.random.normal(k_eps, (BATCH, Z_DIM), jnp.float32)    # torch.randn_like(sigma)
    params = init_params(k_params, INPUT_DIM, H_DIM, Z_DIM)

    # Pure-JAX f32 reference of the same math.
    h_ref = jnp.maximum(x32 @ params["w1"] + params["b1"], 0.0)
    mu_ref = h_ref @ params["wmu"] + params["bmu"]
    sig_ref = h_ref @ params["wsig"] + params["bsig"]
    z_ref = mu_ref + sig_ref * eps32
    h2_ref = jnp.maximum(z_ref @ params["wz"] + params["bz"], 0.0)
    xr_ref = jax.nn.sigmoid(h2_ref @ params["wo"] + params["bo"])

    # 1) f32 path (tight reference check on every generation).
    xr_f, mu_f, sig_f = vae_forward(x32, eps32, params, param_dtype=jnp.float32)
    jax.block_until_ready((xr_f, mu_f, sig_f))
    assert xr_f.shape == (BATCH, INPUT_DIM)
    assert mu_f.shape == (BATCH, Z_DIM) and sig_f.shape == (BATCH, Z_DIM)
    assert jnp.allclose(xr_f, xr_ref, atol=2e-3, rtol=2e-3), "x_reconstructed mismatch (f32)"
    assert jnp.allclose(mu_f, mu_ref, atol=2e-3, rtol=2e-3), "mu mismatch (f32)"
    assert jnp.allclose(sig_f, sig_ref, atol=2e-3, rtol=2e-3), "sigma mismatch (f32)"

    # 2) Default perf path: bf16 weights + bf16 HBM streaming of x / x_rec / mu|sigma.
    x_bf = x32.astype(jnp.bfloat16)
    eps_bf = eps32.astype(jnp.bfloat16)
    xr_b, mu_b, sig_b = vae_forward(x_bf, eps_bf, params)   # param_dtype=bf16, out_dtype=bf16
    jax.block_until_ready((xr_b, mu_b, sig_b))
    assert xr_b.dtype == jnp.bfloat16
    assert jnp.allclose(xr_b.astype(jnp.float32), xr_ref, atol=4e-2, rtol=4e-2), "x_rec mismatch (bf16)"
    assert jnp.allclose(mu_b.astype(jnp.float32), mu_ref, atol=4e-2, rtol=4e-2), "mu mismatch (bf16)"
    assert jnp.allclose(sig_b.astype(jnp.float32), sig_ref, atol=4e-2, rtol=4e-2), "sigma mismatch (bf16)"

    print("KERNEL_OK")
</pallas_src>

<mosaic_0001>
module attributes {stable_mosaic.version = 11 : i64} {
  func.func @_vae_kernel(%arg0: i32, %arg1: memref<8x196xf32, #tpu.memory_space<vmem>>, %arg2: memref<8x64xf32, #tpu.memory_space<vmem>>, %arg3: memref<196x128xf32, #tpu.memory_space<vmem>>, %arg4: memref<1x128xf32, #tpu.memory_space<vmem>>, %arg5: memref<128x128xf32, #tpu.memory_space<vmem>>, %arg6: memref<1x128xf32, #tpu.memory_space<vmem>>, %arg7: memref<64x128xf32, #tpu.memory_space<vmem>>, %arg8: memref<1x128xf32, #tpu.memory_space<vmem>>, %arg9: memref<128x196xf32, #tpu.memory_space<vmem>>, %arg10: memref<1x196xf32, #tpu.memory_space<vmem>>, %arg11: memref<8x196xf32, #tpu.memory_space<vmem>>, %arg12: memref<8x128xf32, #tpu.memory_space<vmem>>) attributes {dimension_semantics = [#tpu.dimension_semantics<parallel>], iteration_bounds = array<i64: 4>, scalar_prefetch = 0 : i64, scratch_operands = 0 : i64, tpu.core_type = #tpu.core_type<tc>, window_params = [{transform_indices = @transform_0, window_bounds = array<i64: 8, 196>}, {transform_indices = @transform_1, window_bounds = array<i64: 8, 64>}, {pipeline_mode = #tpu.pipeline_mode<synchronous>, transform_indices = @transform_2, window_bounds = array<i64: 196, 128>}, {pipeline_mode = #tpu.pipeline_mode<synchronous>, transform_indices = @transform_3, window_bounds = array<i64: 1, 128>}, {pipeline_mode = #tpu.pipeline_mode<synchronous>, transform_indices = @transform_4, window_bounds = array<i64: 128, 128>}, {pipeline_mode = #tpu.pipeline_mode<synchronous>, transform_indices = @transform_5, window_bounds = array<i64: 1, 128>}, {pipeline_mode = #tpu.pipeline_mode<synchronous>, transform_indices = @transform_6, window_bounds = array<i64: 64, 128>}, {pipeline_mode = #tpu.pipeline_mode<synchronous>, transform_indices = @transform_7, window_bounds = array<i64: 1, 128>}, {pipeline_mode = #tpu.pipeline_mode<synchronous>, transform_indices = @transform_8, window_bounds = array<i64: 128, 196>}, {pipeline_mode = #tpu.pipeline_mode<synchronous>, transform_indices = @transform_9, window_bounds = array<i64: 1, 196>}, {transform_indices = @transform_10, window_bounds = array<i64: 8, 196>}, {transform_indices = @transform_11, window_bounds = array<i64: 8, 128>}]} {
    %c0 = arith.constant 0 : index
    %c0_0 = arith.constant 0 : index
    %0 = vector.load %arg1[%c0, %c0_0] : memref<8x196xf32, #tpu.memory_space<vmem>>, vector<8x196xf32>
    %c0_1 = arith.constant 0 : index
    %c0_2 = arith.constant 0 : index
    %1 = vector.load %arg3[%c0_1, %c0_2] : memref<196x128xf32, #tpu.memory_space<vmem>>, vector<196x128xf32>
    %cst = arith.constant dense<0.000000e+00> : vector<8x128xf32>
    %2 = tpu.matmul %0, %1, %cst {dimension_numbers = #tpu.dot_dimension_numbers<[1], [0], [0], [1], [0, 0, 1, 1], [], []>} : vector<8x196xf32>, vector<196x128xf32>, vector<8x128xf32> -> vector<8x128xf32>
    %c0_3 = arith.constant 0 : index
    %c0_4 = arith.constant 0 : index
    %3 = vector.load %arg4[%c0_3, %c0_4] : memref<1x128xf32, #tpu.memory_space<vmem>>, vector<1x128xf32>
    %4 = vector.broadcast %3 : vector<1x128xf32> to vector<8x128xf32>
    %5 = arith.addf %2, %4 : vector<8x128xf32>
    %cst_5 = arith.constant 0.000000e+00 : f32
    %6 = vector.broadcast %cst_5 : f32 to vector<8x128xf32>
    %7 = arith.maximumf %5, %6 : vector<8x128xf32>
    %c0_6 = arith.constant 0 : index
    %c0_7 = arith.constant 0 : index
    %8 = vector.load %arg5[%c0_6, %c0_7] : memref<128x128xf32, #tpu.memory_space<vmem>>, vector<128x128xf32>
    %cst_8 = arith.constant dense<0.000000e+00> : vector<8x128xf32>
    %9 = tpu.matmul %7, %8, %cst_8 {dimension_numbers = #tpu.dot_dimension_numbers<[1], [0], [0], [1], [0, 0, 1, 1], [], []>} : vector<8x128xf32>, vector<128x128xf32>, vector<8x128xf32> -> vector<8x128xf32>
    %c0_9 = arith.constant 0 : index
    %c0_10 = arith.constant 0 : index
    %10 = vector.load %arg6[%c0_9, %c0_10] : memref<1x128xf32, #tpu.memory_space<vmem>>, vector<1x128xf32>
    %11 = vector.broadcast %10 : vector<1x128xf32> to vector<8x128xf32>
    %12 = arith.addf %9, %11 : vector<8x128xf32>
    %13 = vector.extract_strided_slice %12 {offsets = [0, 0], sizes = [8, 64], strides = [1, 1]} : vector<8x128xf32> to vector<8x64xf32>
    %14 = vector.extract_strided_slice %12 {offsets = [0, 64], sizes = [8, 64], strides = [1, 1]} : vector<8x128xf32> to vector<8x64xf32>
    %c0_11 = arith.constant 0 : index
    %c0_12 = arith.constant 0 : index
    %15 = vector.load %arg2[%c0_11, %c0_12] : memref<8x64xf32, #tpu.memory_space<vmem>>, vector<8x64xf32>
    %16 = arith.mulf %14, %15 : vector<8x64xf32>
    %17 = arith.addf %13, %16 : vector<8x64xf32>
    %c0_13 = arith.constant 0 : index
    %c0_14 = arith.constant 0 : index
    %18 = vector.load %arg7[%c0_13, %c0_14] : memref<64x128xf32, #tpu.memory_space<vmem>>, vector<64x128xf32>
    %cst_15 = arith.constant dense<0.000000e+00> : vector<8x128xf32>
    %19 = tpu.matmul %17, %18, %cst_15 {dimension_numbers = #tpu.dot_dimension_numbers<[1], [0], [0], [1], [0, 0, 1, 1], [], []>} : vector<8x64xf32>, vector<64x128xf32>, vector<8x128xf32> -> vector<8x128xf32>
    %c0_16 = arith.constant 0 : index
    %c0_17 = arith.constant 0 : index
    %20 = vector.load %arg8[%c0_16, %c0_17] : memref<1x128xf32, #tpu.memory_space<vmem>>, vector<1x128xf32>
    %21 = vector.broadcast %20 : vector<1x128xf32> to vector<8x128xf32>
    %22 = arith.addf %19, %21 : vector<8x128xf32>
    %cst_18 = arith.constant 0.000000e+00 : f32
    %23 = vector.broadcast %cst_18 : f32 to vector<8x128xf32>
    %24 = arith.maximumf %22, %23 : vector<8x128xf32>
    %c0_19 = arith.constant 0 : index
    %c0_20 = arith.constant 0 : index
    %25 = vector.load %arg9[%c0_19, %c0_20] : memref<128x196xf32, #tpu.memory_space<vmem>>, vector<128x196xf32>
    %cst_21 = arith.constant dense<0.000000e+00> : vector<8x196xf32>
    %26 = tpu.matmul %24, %25, %cst_21 {dimension_numbers = #tpu.dot_dimension_numbers<[1], [0], [0], [1], [0, 0, 1, 1], [], []>} : vector<8x128xf32>, vector<128x196xf32>, vector<8x196xf32> -> vector<8x196xf32>
    %c0_22 = arith.constant 0 : index
    %c0_23 = arith.constant 0 : index
    %27 = vector.load %arg10[%c0_22, %c0_23] : memref<1x196xf32, #tpu.memory_space<vmem>>, vector<1x196xf32>
    %28 = vector.broadcast %27 : vector<1x196xf32> to vector<8x196xf32>
    %29 = arith.addf %26, %28 : vector<8x196xf32>
    %30 = arith.negf %29 : vector<8x196xf32>
    %31 = math.exp %30 : vector<8x196xf32>
    %cst_24 = arith.constant 1.000000e+00 : f32
    %32 = vector.broadcast %cst_24 : f32 to vector<8x196xf32>
    %33 = arith.addf %32, %31 : vector<8x196xf32>
    %34 = arith.divf %32, %33 : vector<8x196xf32>
    %c0_25 = arith.constant 0 : index
    %c0_26 = arith.constant 0 : index
    %35 = vector.load %arg11[%c0_25, %c0_26] : memref<8x196xf32, #tpu.memory_space<vmem>>, vector<8x196xf32>
    tpu.vector_store %arg11[%c0_25, %c0_26], %34 {strides = array<i32>} : memref<8x196xf32, #tpu.memory_space<vmem>>, vector<8x196xf32>,
    %c0_27 = arith.constant 0 : index
    %c0_28 = arith.constant 0 : index
    %36 = vector.load %arg12[%c0_27, %c0_28] : memref<8x128xf32, #tpu.memory_space<vmem>>, vector<8x128xf32>
    tpu.vector_store %arg12[%c0_27, %c0_28], %12 {strides = array<i32>} : memref<8x128xf32, #tpu.memory_space<vmem>>, vector<8x128xf32>,
    return
  }
  func.func @transform_0(%arg0: i32) -> (i32, i32) {
    %c0_i32 = arith.constant 0 : i32
    %c0_i32_0 = arith.constant 0 : i32
    return %arg0, %c0_i32 : i32, i32
  }
  func.func @transform_1(%arg0: i32) -> (i32, i32) {
    %c0_i32 = arith.constant 0 : i32
    %c0_i32_0 = arith.constant 0 : i32
    return %arg0, %c0_i32 : i32, i32
  }
  func.func @transform_2(%arg0: i32) -> (i32, i32) {
    %c0_i32 = arith.constant 0 : i32
    %c0_i32_0 = arith.constant 0 : i32
    %c0_i32_1 = arith.constant 0 : i32
    return %c0_i32, %c0_i32_0 : i32, i32
  }
  func.func @transform_3(%arg0: i32) -> (i32, i32) {
    %c0_i32 = arith.constant 0 : i32
    %c0_i32_0 = arith.constant 0 : i32
    %c0_i32_1 = arith.constant 0 : i32
    return %c0_i32, %c0_i32_0 : i32, i32
  }
  func.func @transform_4(%arg0: i32) -> (i32, i32) {
    %c0_i32 = arith.constant 0 : i32
    %c0_i32_0 = arith.constant 0 : i32
    %c0_i32_1 = arith.constant 0 : i32
    return %c0_i32, %c0_i32_0 : i32, i32
  }
  func.func @transform_5(%arg0: i32) -> (i32, i32) {
    %c0_i32 = arith.constant 0 : i32
    %c0_i32_0 = arith.constant 0 : i32
    %c0_i32_1 = arith.constant 0 : i32
    return %c0_i32, %c0_i32_0 : i32, i32
  }
  func.func @transform_6(%arg0: i32) -> (i32, i32) {
    %c0_i32 = arith.constant 0 : i32
    %c0_i32_0 = arith.constant 0 : i32
    %c0_i32_1 = arith.constant 0 : i32
    return %c0_i32, %c0_i32_0 : i32, i32
  }
  func.func @transform_7(%arg0: i32) -> (i32, i32) {
    %c0_i32 = arith.constant 0 : i32
    %c0_i32_0 = arith.constant 0 : i32
    %c0_i32_1 = arith.constant 0 : i32
    return %c0_i32, %c0_i32_0 : i32, i32
  }
  func.func @transform_8(%arg0: i32) -> (i32, i32) {
    %c0_i32 = arith.constant 0 : i32
    %c0_i32_0 = arith.constant 0 : i32
    %c0_i32_1 = arith.constant 0 : i32
    return %c0_i32, %c0_i32_0 : i32, i32
  }
  func.func @transform_9(%arg0: i32) -> (i32, i32) {
    %c0_i32 = arith.constant 0 : i32
    %c0_i32_0 = arith.constant 0 : i32
    %c0_i32_1 = arith.constant 0 : i32
    return %c0_i32, %c0_i32_0 : i32, i32
  }
  func.func @transform_10(%arg0: i32) -> (i32, i32) {
    %c0_i32 = arith.constant 0 : i32
    %c0_i32_0 = arith.constant 0 : i32
    return %arg0, %c0_i32 : i32, i32
  }
  func.func @transform_11(%arg0: i32) -> (i32, i32) {
    %c0_i32 = arith.constant 0 : i32
    %c0_i32_0 = arith.constant 0 : i32
    return %arg0, %c0_i32 : i32, i32
  }
}

</mosaic_0001>

<bundles_post_ra>
// kernel: tpu_custom_call.1
= control target key start
LH: loop header
LB: loop body
LE: loop exit
PB: predicated region body
PF: predicated region fallthrough
CT: control target
= control target key end

     0   :  { %s1651_s0 = inlined_call_operand.vmem [shape: f32[32,196], index: 0, kind: input, shape index: {}]   ;;  %s1652_s1 = inlined_call_operand.hbm [shape: f32[32,64], index: 1, kind: input, shape index: {}]   ;;  %s1653_s2 = inlined_call_operand.vmem [shape: f32[196,128], index: 2, kind: input, shape index: {}]   ;;  %s1654_s3 = inlined_call_operand.hbm [shape: f32[1,128], index: 3, kind: input, shape index: {}]   ;;  %s1655_s4 = inlined_call_operand.vmem [shape: f32[128,128], index: 4, kind: input, shape index: {}]   ;;  %s1656_s5 = inlined_call_operand.vmem [shape: f32[1,128], index: 5, kind: input, shape index: {}]   ;;  %s1657_s6 = inlined_call_operand.vmem [shape: f32[64,128], index: 6, kind: input, shape index: {}]   ;;  %s1658_s7 = inlined_call_operand.vmem [shape: f32[1,128], index: 7, kind: input, shape index: {}]   ;;  %s1659_s8 = inlined_call_operand.vmem [shape: f32[128,196], index: 8, kind: input, shape index: {}]   ;;  %s1660_s9 = inlined_call_operand.vmem [shape: f32[1,196], index: 9, kind: input, shape index: {}]   ;;  %s1661_s10 = inlined_call_operand.hbm [shape: f32[32,196], index: 10, kind: output, shape index: {0}]   ;;  %s1662_s11 = inlined_call_operand.hbm [shape: f32[32,128], index: 11, kind: output, shape index: {1}]  }
   0x1   :  { %1667 = sst [smem:[#allocation18_spill]] %s1651_s0 }
   0x2   :  { %1668 = sst [smem:[#allocation19_spill]] %s1654_s3 }
   0x3   :  { %17 = vsyncpa [#allocation3], 0 }
   0x4   :  { %19 = vsyncpa [#allocation3 + $0x1], 0 }
   0x5   :  { %20 = vsyncpa [#allocation6], 0 }
   0x6   :  { %21 = vsyncpa [#allocation4], 0 }
   0x7   :  { %23 = vsyncpa [#allocation4 + $0x1], 0 }
   0x8   :  { %24 = vsyncpa [#allocation9], 0 }
   0x9   :  { %26 = vsyncpa [#allocation9 + $0x1], 0  ;;  %s1225_s17 = smov 0   ;;  %s1227_s18 = smov 0  }
   0xa   :  { %s1229_s19 = smov 0   ;;  %s1231_s20 = smov 0  }
   0xb LB: > { %1669 = sst [smem:[#allocation14_spill]] %s1157_s19  ;;  %s1246_s21 = sadd.s32 4294967295, %s1161_s20   ;;  %s1161_s20 = sphi %s1231_s20, %s1681_s20   ;;  %s1157_s19 = sphi %s1229_s19, %s1683_s19   ;;  %s1153_s18 = sphi %s1227_s18, %s1685_s18   ;;  %s1149_s17 = sphi %s1225_s17, %s1684_s17  }
   0xc   : > { %s898_s22 = sadd.s32 4294967294, %s1161_s20   ;;  %p78_p0 = scmp.ne.s32.totalorder %s1153_s18, %s1149_s17 }
   0xd   : > { %p79_p1 = scmp.eq.s32.totalorder %s1246_s21, 0  ;;  %p270_p2 = scmp.eq.s32.totalorder %s1246_s21, 3 }
   0xe   : > { %p276_p3 = scmp.eq.s32.totalorder %s898_s22, 3  ;;  %p899_p5 = scmp.ge.s32.totalorder %s1161_s20, 1 }
   0xf   : > { %p1255_p4 = por %p79_p1, %p78_p0  ;;  %p309_p7 = scmp.lt.s32.totalorder %s1161_s20, 5 }
  0x10   : > { %p1260_p6 = por %p276_p3, %p78_p0  ;;  %s1673_s3 = sld [smem:[#allocation19_spill]] }
  0x11   : > { %p1268_p8 = pnand %p899_p5, %p309_p7  ;;  %s1163_s29 = smov [#allocation5]  }
  0x12   : > { %s1671_s24 = scalar_select %p1260_p6, 1, 0 }
  0x13   : > { %p935_p9 = pneg %p1268_p8  ;;  %s326_s30 = sshll.u32 %s1163_s29, 4  ;;  %s327_s30 = int_to_ptr.vmem [resolvable:$true] %s326_s30 }
  0x14   : > { %1672 = sst [smem:[#allocation15_spill]] %s1671_s24  ;;  %s1277_s12 = sadd.s32 1, %s1161_s20  }
  0x15   : > { %p936_p10 = pnand %p935_p9, %p79_p1  ;;  %1675 = sst [smem:[#allocation16_spill]] %s1277_s12 }
  0x16   : > { %s324_s27 = sshll.u32 %s1673_s3, 4  ;;  %s65_s13 = sadd.s32 1, %s1157_s19  ;;  %s325_s27 = int_to_ptr.hbm [resolvable:$true] %s324_s27 }
  0x17   : > { %s62_s14 = ssub.s32 %s1161_s20, %s1277_s12  ;;  %p72_p12 = scmp.ne.s32.totalorder %s1157_s19, %s1153_s18 }
  0x18   : > { %938 = dma.hbm_to_vmem [thread:$0]  (!%p936_p10), %s325_s27, 16, %s327_s30, [#allocation6]  }
  0x19   : > { %p63_p11 = scmp.eq.s32.totalorder %s62_s14, 0  ;;  %p73_p13 = scmp.eq.s32.totalorder %s1161_s20, 0 }
  0x1a   : > { %p1290_p0 = por %p270_p2, %p72_p12  ;;  %p951_p3 = scmp.lt.s32.totalorder %s1161_s20, 4 }
  0x1b   : > { %s1286_s15 = scalar_select %p63_p11, %s1157_s19, %s65_s13  }
  0x1c   : > { %s363_s22 = sand.u32 1, %s1157_s19   ;;  %s903_s25 = sshll.u32 %s1161_s20, 3 }
  0x1d   : > { %1676 = sst [smem:[#allocation17_spill]] %s1286_s15  ;;  %p74_p5 = por %p73_p13, %p72_p12 }
  0x1e   : > { %s902_s26 = sshll.u32 %s363_s22, 3  ;;  %s371_s12 = scalar_lea.hbm %s1652_s1, %s903_s25 }
  0x1f   : > { %s373_s27 = sshll.u32 %s371_s12, 4  ;;  %s367_s30 = scalar_lea.vmem [#allocation2], %s902_s26  ;;  %s374_s27 = int_to_ptr.hbm [resolvable:$true] %s373_s27 }
  0x20   : > { %s375_s14 = sshll.u32 %s367_s30, 4  ;;  %p1300_p7 = pnand %p951_p3, %p74_p5  ;;  %s376_s14 = int_to_ptr.vmem [resolvable:$true] %s375_s14 }
  0x21   : > { %s364_s15 = scalar_lea.sflag [#allocation3], %s363_s22  ;;  %s1029_s24 = sshra.s32 %s374_s27, 4  ;;  %s1030_s24 = int_to_ptr.hbm [resolvable:$true] %s1029_s24 }
  0x22   : > { %s1031_s19 = scalar_lea.hbm %s1030_s24, 8  ;;  %p1033_p9 = pneg %p1300_p7 }
  0x23   : > { %p1032_p2 = scmp.ne.s32.totalorder %s1030_s24, %s1031_s19  ;;  %s1036_s25 = scalar_lea.hbm %s1652_s1, 32 }
  0x24   : > { %p1037_p12 = scmp.lt.s32.totalorder %s1030_s24, %s1652_s1  ;;  %p1038_p13 = scmp.lt.s32.totalorder %s1036_s25, %s1031_s19 }
  0x25   : > { %p1034_p10 = pnand %p1033_p9, %p1032_p2 }
  0x26   : > { %p1039_p3 = por %p1038_p13, %p1037_p12 }
  0x27   : > { %p1035_p11 = pneg %p1034_p10 }
  0x29   : > { %p1040_p5 = pnand %p1039_p3, %p1035_p11 }
  0x2b   : > { %1043 = shalt.err (!%p1040_p5)
}
  0x2c   : > { %942 = dma.hbm_to_vmem [thread:$0]  (!%p1300_p7), %s374_s27, 128, %s376_s14, %s364_s15  }
  0x2d   : > { %384 = sbr.rel (%p1268_p8) target bundleno = 771 (0x303), region = 60  ;;  %s1317_s22 = sand.u32 (!%p1268_p8), 1, %s1153_s18  }
  0x2e   : > { %s905_s30 = sshll.u32 (!%p1268_p8), %s1317_s22, 3  ;;  %s387_s3 = scalar_lea.sflag (!%p1268_p8), [#allocation3], %s1317_s22 }
  0x2f   : > { %s1323_s19 = scalar_lea.vmem (!%p1268_p8), [#allocation2], %s905_s30 }
  0x32   : > { %1132 = dma.done.wait (%p1255_p4), %s387_s3, 128  }
  0x33   : > { %1134 = vsyncadd (%p1255_p4), %s387_s3, 4294967168 }
  0x34   : > { %1136 = dma.done.wait (%p79_p1), [#allocation6], 16  }
  0x35   : > { %1138 = vsyncadd (%p79_p1), [#allocation6], 4294967280  ;;  %v467_v0 = vld [vmem:[%s1653_s2 + $0x78] sm:$0xff]  ;;  %v466_v1 = vld [vmem:[%s1653_s2 + $0x70] sm:$0xff]  ;;  %vm485_vm0 = vcmask 1043456   ;;  %p445_p1 = scmp.lt.s32.totalorder %s1246_s21, 3 }
  0x36   : > { %489 = vmatpush.msra.mxu0 %v467_v0  ;;  %v465_v2 = vld [vmem:[%s1653_s2 + $0x68] sm:$0xff]  ;;  %v476_v3 = vld [vmem:[%s1653_s2 + $0xc0] sm:$0xf]  ;;  %v475_v4 = vld [vmem:[%s1653_s2 + $0xb8] sm:$0xff]  ;;  %s1679_s0 = sld [smem:[#allocation18_spill]]  ;;  %vm481_vm1 = vcmask 556032  }
  0x37   : > { %v464_v5 = vld [vmem:[%s1653_s2 + $0x60] sm:$0xff]  ;;  %911 = vmatpush.msk.msra.mxu1 %vm485_vm0, %v476_v3  ;;  %v474_v6 = vld [vmem:[%s1653_s2 + $0xb0] sm:$0xff]  ;;  %v463_v7 = vld [vmem:[%s1653_s2 + $0x58] sm:$0xff]  ;;  %s446_s14 = scalar_select %p445_p1, %s1246_s21, 3  ;;  %vm593_vm2 = vcmask 523264  }
  0x38   : > { %490 = vmatpush.msra.mxu0 %v466_v1  ;;  %v473_v8 = vld [vmem:[%s1653_s2 + $0xa8] sm:$0xff]  ;;  %v462_v9 = vld [vmem:[%s1653_s2 + $0x50] sm:$0xff]  ;;  %v472_v10 = vld [vmem:[%s1653_s2 + $0xa0] sm:$0xff]  ;;  %s1164_s12 = smov 64   ;;  %s1493_s3 = scalar_lea.vmem [#allocation8], %s905_s30 }
  0x39   : > { %517 = vmatpush.msra.mxu1 %v475_v4  ;;  %v545_v11 = vld [vmem:[%s1655_s4 + $0x78] sm:$0xff]  ;;  %v544_v12 = vld [vmem:[%s1655_s4 + $0x70] sm:$0xff]  ;;  %v461_v13 = vld [vmem:[%s1653_s2 + $0x48] sm:$0xff]  ;;  %s923_s13 = sshll.u32 %s446_s14, 4  ;;  %s920_s15 = sshll.u32 %s1246_s21, 3 }
  0x3a   : > { %491 = vmatpush.msra.mxu0 %v465_v2  ;;  %550 = vmatpush.msra.mxu2 %v545_v11  ;;  %v471_v14 = vld [vmem:[%s1653_s2 + $0x98] sm:$0xff]  ;;  %v543_v15 = vld [vmem:[%s1655_s4 + $0x68] sm:$0xff]  ;;  %v460_v16 = vld [vmem:[%s1653_s2 + $0x40] sm:$0xff]  ;;  %s768_s23 = scalar_lea.hbm %s1662_s11, %s920_s15  ;;  %s770_s30 = sshll.u32 %s1493_s3, 4  ;;  %s771_s30 = int_to_ptr.vmem [resolvable:$true] %s770_s30 }
  0x3b   : > { %518 = vmatpush.msra.mxu1 %v474_v6  ;;  %v470_v17 = vld [vmem:[%s1653_s2 + $0x90] sm:$0xff]  ;;  %v542_v18 = vld [vmem:[%s1655_s4 + $0x60] sm:$0xff]  ;;  %v459_v19 = vld [vmem:[%s1653_s2 + $0x38] sm:$0xff]  ;;  %s743_s25 = scalar_lea.sflag [#allocation9], %s1317_s22  ;;  %s1079_s24 = scalar_lea.hbm %s1662_s11, 32 }
  0x3c   : > { %492 = vmatpush.msra.mxu0 %v464_v5  ;;  %551 = vmatpush.msra.mxu2 %v544_v12  ;;  %v469_v20 = vld [vmem:[%s1653_s2 + $0x88] sm:$0xff]  ;;  %v541_v21 = vld [vmem:[%s1655_s4 + $0x58] sm:$0xff]  ;;  %v458_v22 = vld [vmem:[%s1653_s2 + $0x30] sm:$0xff]  ;;  %s1407_s14 = scalar_lea.vmem %s1679_s0, %s923_s13 }
  0x3d   : > { %519 = vmatpush.msra.mxu1 %v473_v8  ;;  %v468_v23 = vld [vmem:[%s1653_s2 + $0x80] sm:$0xff]  ;;  %v540_v24 = vld [vmem:[%s1655_s4 + $0x50] sm:$0xff]  ;;  %v457_v25 = vld [vmem:[%s1653_s2 + $0x28] sm:$0xff] }
  0x3e   : > { %493 = vmatpush.msra.mxu0 %v463_v7  ;;  %552 = vmatpush.msra.mxu2 %v543_v15  ;;  %v451_v26 = vld [vmem:[%s1407_s14 + $0x8] sm:$0xff]  ;;  %v456_v28 = vld [vmem:[%s1653_s2 + $0x20] sm:$0xff]  ;;  %v455_v30 = vld [vmem:[%s1653_s2 + $0x18] sm:$0xff] }
  0x3f   : > { %520 = vmatpush.msra.mxu1 %v472_v10  ;;  %v539_v27 = vld [vmem:[%s1655_s4 + $0x48] sm:$0xff]  ;;  %v538_v29 = vld [vmem:[%s1655_s4 + $0x40] sm:$0xff]  ;;  %v537_v31 = vld [vmem:[%s1655_s4 + $0x38] sm:$0xff] }
  0x40   : > { %494 = vmatpush.msra.mxu0 %v462_v9  ;;  %553 = vmatpush.msra.mxu2 %v542_v18  ;;  %v454_v32 = vld [vmem:[%s1653_s2 + $0x10] sm:$0xff]  ;;  %v453_v34 = vld [vmem:[%s1653_s2 + $0x8] sm:$0xff]  ;;  %v452_v36 = vld [vmem:[%s1653_s2] sm:$0xff] }
  0x41   : > { %521 = vmatpush.msra.mxu1 %v471_v14  ;;  %v536_v33 = vld [vmem:[%s1655_s4 + $0x30] sm:$0xff]  ;;  %v535_v35 = vld [vmem:[%s1655_s4 + $0x28] sm:$0xff]  ;;  %v450_v37 = vld [vmem:[%s1407_s14] sm:$0xff] }
  0x42   : > { %495 = vmatpush.msra.mxu0 %v461_v13  ;;  %554 = vmatpush.msra.mxu2 %v541_v21  ;;  %v534_v38 = vld [vmem:[%s1655_s4 + $0x20] sm:$0xff]  ;;  %v533_v39 = vld [vmem:[%s1655_s4 + $0x18] sm:$0xff]  ;;  %v532_v40 = vld [vmem:[%s1655_s4 + $0x10] sm:$0xff] }
  0x43   : > { %522 = vmatpush.msra.mxu1 %v470_v17  ;;  %v531_v41 = vld [vmem:[%s1655_s4 + $0x8] sm:$0xff]  ;;  %v530_v42 = vld [vmem:[%s1655_s4] sm:$0xff]  ;;  %v988_v44 = vld [vmem:[#allocation5] ss:$0 sm:$0xff] }
  0x44   : > { %496 = vmatpush.msra.mxu0 %v460_v16  ;;  %555 = vmatpush.msra.mxu2 %v540_v24  ;;  %v570_v43 = vld [vmem:[%s1323_s19] sm:$0xff]  ;;  %v588_v50 = vld [vmem:[%s1657_s6 + $0x38] sm:$0xff]  ;;  %v587_v51 = vld [vmem:[%s1657_s6 + $0x30] sm:$0xff] }
  0x45   : > { %523 = vmatpush.msra.mxu1 %v469_v20  ;;  %572 = vrot.lane.b32.xlu0 %v570_v43, %s1164_s12  ;;  %v586_v52 = vld [vmem:[%s1657_s6 + $0x28] sm:$0xff]  ;;  %v585_v53 = vld [vmem:[%s1657_s6 + $0x20] sm:$0xff]  ;;  %v584_v54 = vld [vmem:[%s1657_s6 + $0x18] sm:$0xff] }
  0x46   : > { %497 = vmatpush.msra.mxu0 %v459_v19  ;;  %556 = vmatpush.msra.mxu2 %v539_v27  ;;  %v583_v55 = vld [vmem:[%s1657_s6 + $0x10] sm:$0xff]  ;;  %v582_v56 = vld [vmem:[%s1657_s6 + $0x8] sm:$0xff]  ;;  %v989_v57 = vld [vmem:[%s1656_s5] ss:$0 sm:$0xff] }
  0x47   : > { %524 = vmatpush.msra.mxu1 %v468_v23  ;;  %605 = vmatpush.msra.mxu3 %v588_v50  ;;  %v581_v62 = vld [vmem:[%s1657_s6] sm:$0xff]  ;;  %v648_v63 = vld [vmem:[%s1659_s8 + $0xf0] sm:$0xff]  ;;  %v649_v0 = vld [vmem:[%s1659_s8 + $0xf8] sm:$0xff] }
  0x48   : > { %498 = vmatpush.msra.mxu0 %v458_v22  ;;  %912 = vmatmul.msk.f32.vlgmr.msra.gmra.mxu1 %vm481_vm1, %v451_v26  ;;  %v646_v1 = vld [vmem:[%s1659_s8 + $0xe0] sm:$0xff]  ;;  %v647_v2 = vld [vmem:[%s1659_s8 + $0xe8] sm:$0xff]  ;;  %v644_v3 = vld [vmem:[%s1659_s8 + $0xd0] sm:$0xff] }
  0x49   : > { %557 = vmatpush.msra.mxu2 %v538_v29  ;;  %606 = vmatpush.msra.mxu3 %v587_v51  ;;  %v645_v4 = vld [vmem:[%s1659_s8 + $0xd8] sm:$0xff]  ;;  %v642_v5 = vld [vmem:[%s1659_s8 + $0xc0] sm:$0xff]  ;;  %v643_v6 = vld [vmem:[%s1659_s8 + $0xc8] sm:$0xff] }
  0x4a   : > { %499 = vmatpush.msra.mxu0 %v457_v25  ;;  %676 = vmatpush.msrb.mxu1 %v649_v0  ;;  %v640_v7 = vld [vmem:[%s1659_s8 + $0xb0] sm:$0xff]  ;;  %v641_v8 = vld [vmem:[%s1659_s8 + $0xb8] sm:$0xff]  ;;  %v638_v9 = vld [vmem:[%s1659_s8 + $0xa0] sm:$0xff] }
  0x4b   : > { %558 = vmatpush.msra.mxu2 %v537_v31  ;;  %607 = vmatpush.msra.mxu3 %v586_v52  ;;  %v639_v10 = vld [vmem:[%s1659_s8 + $0xa8] sm:$0xff]  ;;  %v636_v11 = vld [vmem:[%s1659_s8 + $0x90] sm:$0xff]  ;;  %v637_v12 = vld [vmem:[%s1659_s8 + $0x98] sm:$0xff] }
  0x4c   : > { %500 = vmatpush.msra.mxu0 %v456_v28  ;;  %677 = vmatpush.msrb.mxu1 %v647_v2  ;;  %v634_v13 = vld [vmem:[%s1659_s8 + $0x80] sm:$0xff]  ;;  %v635_v14 = vld [vmem:[%s1659_s8 + $0x88] sm:$0xff]  ;;  %v632_v15 = vld [vmem:[%s1659_s8 + $0x70] sm:$0xff] }
  0x4d   : > { %559 = vmatpush.msra.mxu2 %v536_v33  ;;  %608 = vmatpush.msra.mxu3 %v585_v53  ;;  %v633_v16 = vld [vmem:[%s1659_s8 + $0x78] sm:$0xff]  ;;  %v630_v17 = vld [vmem:[%s1659_s8 + $0x60] sm:$0xff]  ;;  %v631_v18 = vld [vmem:[%s1659_s8 + $0x68] sm:$0xff] }
  0x4e   : > { %501 = vmatpush.msra.mxu0 %v455_v30  ;;  %678 = vmatpush.msrb.mxu1 %v645_v4  ;;  %v628_v19 = vld [vmem:[%s1659_s8 + $0x50] sm:$0xff]  ;;  %v629_v20 = vld [vmem:[%s1659_s8 + $0x58] sm:$0xff]  ;;  %v626_v21 = vld [vmem:[%s1659_s8 + $0x40] sm:$0xff] }
  0x4f   : > { %560 = vmatpush.msra.mxu2 %v535_v35  ;;  %609 = vmatpush.msra.mxu3 %v584_v54  ;;  %v627_v22 = vld [vmem:[%s1659_s8 + $0x48] sm:$0xff]  ;;  %v624_v23 = vld [vmem:[%s1659_s8 + $0x30] sm:$0xff]  ;;  %v625_v24 = vld [vmem:[%s1659_s8 + $0x38] sm:$0xff] }
  0x50   : > { %502 = vmatpush.msra.mxu0 %v454_v32  ;;  %679 = vmatpush.msrb.mxu1 %v643_v6  ;;  %v622_v27 = vld [vmem:[%s1659_s8 + $0x20] sm:$0xff]  ;;  %v623_v28 = vld [vmem:[%s1659_s8 + $0x28] sm:$0xff]  ;;  %v620_v29 = vld [vmem:[%s1659_s8 + $0x10] sm:$0xff] }
  0x51   : > { %561 = vmatpush.msra.mxu2 %v534_v38  ;;  %610 = vmatpush.msra.mxu3 %v583_v55  ;;  %v621_v30 = vld [vmem:[%s1659_s8 + $0x18] sm:$0xff]  ;;  %v618_v31 = vld [vmem:[%s1659_s8] sm:$0xff]  ;;  %v619_v32 = vld [vmem:[%s1659_s8 + $0x8] sm:$0xff] }
  0x52   : > { %503 = vmatpush.msra.mxu0 %v453_v34  ;;  %680 = vmatpush.msrb.mxu1 %v641_v8  ;;  %v990_v33 = vld [vmem:[%s1658_s7] ss:$0 sm:$0xff] }
  0x53   : > { %562 = vmatpush.msra.mxu2 %v533_v39  ;;  %611 = vmatpush.msra.mxu3 %v582_v56 }
  0x54   : > { %504 = vmatpush.msra.mxu0 %v452_v36  ;;  %681 = vmatpush.msrb.mxu1 %v639_v10 }
  0x55   : > { %505 = vmatmul.f32.vlgmr.msra.gmra.mxu0 %v450_v37  ;;  %563 = vmatpush.msra.mxu2 %v532_v40 }
  0x56   : > { %612 = vmatpush.msra.mxu3 %v581_v62  ;;  %682 = vmatpush.msrb.mxu1 %v637_v12 }
  0x57   : > { %564 = vmatpush.msra.mxu2 %v531_v41 }
  0x58   : > { %656 = vmatpush.msrb.mxu3 %v648_v63  ;;  %683 = vmatpush.msrb.mxu1 %v635_v14 }
  0x59   : > { %565 = vmatpush.msra.mxu2 %v530_v42 }
  0x5a   : > { %657 = vmatpush.msrb.mxu3 %v646_v1  ;;  %684 = vmatpush.msrb.mxu1 %v633_v16 }
  0x5c   : > { %658 = vmatpush.msrb.mxu3 %v644_v3  ;;  %685 = vmatpush.msrb.mxu1 %v631_v18 }
  0x5e   : > { %659 = vmatpush.msrb.mxu3 %v642_v5  ;;  %686 = vmatpush.msrb.mxu1 %v629_v20 }
  0x60   : > { %660 = vmatpush.msrb.mxu3 %v640_v7  ;;  %687 = vmatpush.msrb.mxu1 %v627_v22 }
  0x62   : > { %661 = vmatpush.msrb.mxu3 %v638_v9  ;;  %688 = vmatpush.msrb.mxu1 %v625_v24 }
  0x64   : > { %662 = vmatpush.msrb.mxu3 %v636_v11  ;;  %689 = vmatpush.msrb.mxu1 %v623_v28 }
  0x66   : > { %663 = vmatpush.msrb.mxu3 %v634_v13  ;;  %690 = vmatpush.msrb.mxu1 %v621_v30 }
  0x68   : > { %664 = vmatpush.msrb.mxu3 %v632_v15  ;;  %691 = vmatpush.msrb.mxu1 %v619_v32 }
  0x6a   : > { %665 = vmatpush.msrb.mxu3 %v630_v17 }
  0x6c   : > { %666 = vmatpush.msrb.mxu3 %v628_v19 }
  0x6e   : > { %667 = vmatpush.msrb.mxu3 %v626_v21 }
  0x70   : > { %668 = vmatpush.msrb.mxu3 %v624_v23 }
  0x72   : > { %669 = vmatpush.msrb.mxu3 %v622_v27 }
  0x74   : > { %670 = vmatpush.msrb.mxu3 %v620_v29 }
  0x76   : > { %671 = vmatpush.msrb.mxu3 %v618_v31 }
  0xb7   : > { %v573_v59 = vpop.permute.xlu0 %572 }
  0xc5   : > { %v526_v46 = vpop.f32.mrf.mxu1 }
  0xd2   : > { %v506_v45 = vpop.f32.mrf.mxu0 }
  0xd3   : > { %v507_v47 = vadd.f32 %v988_v44, %v506_v45 }
  0xd5   : > { %v527_v48 = vadd.f32 %v526_v46, %v507_v47 }
  0xd7   : > { %v529_v49 = vmax.f32 %v527_v48, 0.0 }
  0xd9   : > { %566 = vmatmul.f32.vlgmr.msra.gmra.mxu2 %v529_v49 }
 0x15c   : > { %v567_v58 = vpop.f32.mrf.mxu2 }
 0x15d   : > { %v568_v60 = vadd.f32 %v989_v57, %v567_v58 }
 0x15f   : > { %736 = vst [vmem:[%s1493_s3] sm:$0xff] %v568_v60  ;;  %v575_v61 = vmul.f32 %v573_v59, %v568_v60 }
 0x161   : > { %577 = vrot.lane.b32.xlu0 %v575_v61, %s1164_s12  ;;  %s772_s12 = sshll.u32 %s768_s23, 4  ;;  %s773_s12 = int_to_ptr.hbm [resolvable:$true] %s772_s12 }
 0x162   : > { %s1073_s26 = sshra.s32 %s773_s12, 4  ;;  %s1074_s26 = int_to_ptr.hbm [resolvable:$true] %s1073_s26 }
 0x163   : > { %s1075_s29 = scalar_lea.hbm %s1074_s26, 8  ;;  %p1080_p2 = scmp.lt.s32.totalorder %s1074_s26, %s1662_s11 }
 0x164   : > { %p1076_p4 = scmp.ne.s32.totalorder %s1074_s26, %s1075_s29  ;;  %p1081_p9 = scmp.lt.s32.totalorder %s1079_s24, %s1075_s29 }
 0x166   : > { %p1077_p8 = pnand %p1076_p4, %p1290_p0  ;;  %p1082_p10 = por %p1081_p9, %p1080_p2 }
 0x168   : > { %p1078_p7 = pneg %p1077_p8 }
 0x16a   : > { %p1083_p11 = pnand %p1082_p10, %p1078_p7 }
 0x1d3   : > { %v578_v25 = vpop.permute.xlu0 %577 }
 0x1d4   : > { %v580_v26 = vadd.f32 %v578_v25, %v568_v60 }
 0x1d6   : > { %913 = vmatmul.msk.f32.vlgmr.msra.gmra.mxu3 %vm593_vm2, %v580_v26 }
 0x259   : > { %v614_v34 = vpop.f32.mrf.mxu3 }
 0x25a   : > { %v615_v35 = vadd.f32 %v990_v33, %v614_v34 }
 0x25c   : > { %v617_v36 = vmax.f32 %v615_v35, 0.0 }
 0x25e   : > { %672 = vmatmul.f32.vlgmr.msrb.gmra.mxu3 %v617_v36  ;;  %692 = vmatmul.f32.vlgmr.msrb.gmra.mxu1 %v617_v36 }
 0x25f   : > { %1086 = shalt.err (!%p1083_p11)
}
 0x260   : > { %932 = dma.vmem_to_hbm [thread:$0]  (%p1290_p0), %s771_s30, 128, %s773_s12, %s743_s25   ;;  %v650_v37 = vld [vmem:[%s1660_s9] sm:$0x3] }
 0x261   : > { %v653_v38 = vperm.slane %v650_v37, 1  ;;  %v652_v42 = vperm.slane %v650_v37, 0  ;;  %s907_s0 = sshll.u32 %s1317_s22, 4  ;;  %s924_s14 = sshll.u32 %s1246_s21, 4 }
 0x262   : > { %s754_s30 = scalar_lea.hbm %s1661_s10, %s924_s14  ;;  %s437_s12 = scalar_lea.vmem [#allocation7], %s907_s0 }
 0x263   : > { %s756_s21 = sshll.u32 %s437_s12, 4  ;;  %s758_s25 = sshll.u32 %s754_s30, 4  ;;  %s757_s21 = int_to_ptr.vmem [resolvable:$true] %s756_s21  ;;  %s759_s25 = int_to_ptr.hbm [resolvable:$true] %s758_s25 }
 0x264   : > { %s738_s26 = scalar_lea.sflag [#allocation4], %s1317_s22  ;;  %s1101_s29 = sshra.s32 %s759_s25, 4  ;;  %s1102_s29 = int_to_ptr.hbm [resolvable:$true] %s1101_s29 }
 0x265   : > { %s1103_s13 = scalar_lea.hbm %s1102_s29, 16  ;;  %s1107_s28 = scalar_lea.hbm %s1661_s10, 64 }
 0x266   : > { %p1104_p12 = scmp.ne.s32.totalorder %s1102_s29, %s1103_s13  ;;  %p1108_p5 = scmp.lt.s32.totalorder %s1102_s29, %s1661_s10 }
 0x267   : > { %p1109_p1 = scmp.lt.s32.totalorder %s1107_s28, %s1103_s13 }
 0x268   : > { %p1105_p13 = pnand %p1104_p12, %p1290_p0 }
 0x269   : > { %p1110_p4 = por %p1109_p1, %p1108_p5 }
 0x26a   : > { %p1106_p3 = pneg %p1105_p13 }
 0x26c   : > { %p1111_p8 = pnand %p1110_p4, %p1106_p3 }
 0x2db   : > { %v693_v39 = vpop.f32.mrf.mxu1 }
 0x2dc   : > { %v694_v40 = vadd.f32 %v693_v39, %v653_v38 }
 0x2de   : > { %v915_v41 = vmul.f32 -1.442695, %v694_v40 }
 0x2e0   : > { %991 = vpow2.f32 %v915_v41 }
 0x2e1   : > { %v673_v43 = vpop.f32.mrf.mxu3 }
 0x2e2   : > { %v674_v44 = vadd.f32 %v673_v43, %v652_v42 }
 0x2e4   : > { %v914_v45 = vmul.f32 -1.442695, %v674_v44 }
 0x2e6   : > { %v992_v46 = vpop.eup %991  ;;  %993 = vpow2.f32 %v914_v45 }
 0x2e7   : > { %v703_v47 = vadd.f32 1.0, %v992_v46 }
 0x2e9   : > { %995 = vrcp.f32 %v703_v47  ;;  %v730_v53 = vand.u32 2147483648, %v703_v47  ;;  %v728_v55 = vand.u32 2147483647, %v703_v47  ;;  %vm724_vm4 = vweird.f32 %v703_v47 }
 0x2eb   : > { %v731_v59 = vor.u32 1.1754944e-38, %v730_v53  ;;  %vm729_vm6 = vcmp.eq.f32.partialorder %v728_v55, 8.507059e+37 }
 0x2ec   : > { %v994_v48 = vpop.eup %993 }
 0x2ed   : > { %v702_v49 = vadd.f32 1.0, %v994_v48 }
 0x2ef   : > { %v996_v50 = vpop.eup %995  ;;  %997 = vrcp.f32 %v702_v49  ;;  %v715_v62 = vand.u32 2147483648, %v702_v49  ;;  %v713_v1 = vand.u32 2147483647, %v702_v49  ;;  %vm709_vm8 = vweird.f32 %v702_v49 }
 0x2f0   : > { %v720_v51 = vmul.f32 %v996_v50, %v703_v47  ;;  %vm725_vm3 = vweird.f32 %v996_v50 }
 0x2f1   : > { %vm726_vm5 = vmor %vm724_vm4, %vm725_vm3  ;;  %v716_v3 = vor.u32 1.1754944e-38, %v715_v62  ;;  %vm714_vm10 = vcmp.eq.f32.partialorder %v713_v1, 8.507059e+37 }
 0x2f2   : > { %v721_v52 = vsub.f32 1.0, %v720_v51 }
 0x2f4   : > { %v722_v54 = vmul.f32 %v996_v50, %v721_v52 }
 0x2f5   : > { %v998_v56 = vpop.eup %997 }
 0x2f6   : > { %v705_v57 = vmul.f32 %v998_v56, %v702_v49  ;;  %v723_v58 = vadd.f32 %v996_v50, %v722_v54  ;;  %vm710_vm7 = vweird.f32 %v998_v56 }
 0x2f7   : > { %vm711_vm9 = vmor %vm709_vm8, %vm710_vm7 }
 0x2f8   : > { %v706_v60 = vsub.f32 1.0, %v705_v57  ;;  %v727_v61 = vsel %vm726_vm5, %v996_v50, %v723_v58 }
 0x2f9   : > { %v732_v63 = vsel %vm729_vm6, %v731_v59, %v727_v61 }
 0x2fa   : > { %v707_v0 = vmul.f32 %v998_v56, %v706_v60  ;;  %735 = vst.msk [vmem:[%s437_s12 + $0x8] sm:$0xff] %vm481_vm1, %v732_v63 }
 0x2fc   : > { %v708_v2 = vadd.f32 %v998_v56, %v707_v0 }
 0x2fe   : > { %v712_v4 = vsel %vm711_vm9, %v998_v56, %v708_v2 }
 0x2ff   : > { %v717_v5 = vsel %vm714_vm10, %v716_v3, %v712_v4 }
 0x300   : > { %734 = vst [vmem:[%s437_s12] sm:$0xff] %v717_v5 }
 0x301   : > { %1114 = shalt.err (!%p1111_p8)
}
 0x302   : > { %931 = dma.vmem_to_hbm [thread:$0]  (%p1290_p0), %s757_s21, 256, %s759_s25, %s738_s26  }
 0x303 PF: > { %p953_p7 = scmp.ge.s32.totalorder %s1161_s20, 2  ;;  %s784_s0 = sand.u32 1, %s1149_s17  }
 0x304   : > { %s785_s14 = scalar_lea.sflag [#allocation4], %s784_s0 }
 0x305   : > { %p944_p2 = pnand %p953_p7, %p1260_p6 }
 0x307   : > { %p945_p9 = pneg %p944_p2 }
 0x309   : > { %1140 = dma.done.wait (%p945_p9), %s785_s14, 256  }
 0x30a   : > { %1142 = vsyncadd (%p945_p9), %s785_s14, 4294967040  ;;  %s795_s27 = scalar_lea.sflag [#allocation9], %s784_s0 }
 0x30b   : > { %1144 = dma.done.wait (%p945_p9), %s795_s27, 128  }
 0x30c   : > { %1146 = vsyncadd (%p945_p9), %s795_s27, 4294967168  ;;  %s1681_s20 = sld [smem:[#allocation16_spill]]  ;;  %s1684_s17 = smov %s1153_s18 }
 0x30d   : > { %s1682_s23 = sld [smem:[#allocation14_spill]] }
 0x30e   : > { %s1683_s19 = sld [smem:[#allocation17_spill]] }
 0x312   : > { %p29_p0 = scmp.ge.s32.totalorder %s1681_s20, 6  }
 0x313   : > { %s1685_s18 = smov %s1682_s23 }
 0x314   :  { %31 = sbr.rel (!%p29_p0) target bundleno = 11 (0xb), region = 129 }
 0x319   :  { %801 = vsyncpa [#allocation3], 1 }
 0x31a   :  { %803 = vsyncpa [#allocation3 + $0x1], 1 }
 0x31b   :  { %804 = vsyncpa [#allocation6], 1 }
 0x31c   :  { %805 = vsyncpa [#allocation4], 1 }
 0x31d   :  { %807 = vsyncpa [#allocation4 + $0x1], 1 }
 0x31e   :  { %808 = vsyncpa [#allocation9], 1 }
 0x31f   :  { %810 = vsyncpa [#allocation9 + $0x1], 1 }

</bundles_post_ra>
